<compile_context>
chip_gen: v7x
topology: tpu7x:2x2x1
jax: 0.10.0
libtpu: 0.0.40
codegen_flags: <defaults>
</compile_context>

<pallas_src>
import jax
import jax.numpy as jnp
from jax import lax
from jax.experimental import pallas as pl
from jax.experimental.pallas import tpu as pltpu

# --- small synthetic config (stands in for MixVPR's 1024ch x 40x30 config) ---
B = 2
CIN, IMG_H, IMG_W = 3, 32, 32
PS = 8                          # patchify conv, stride = kernel (stand-in for /16 backbone)
FH, FW = IMG_H // PS, IMG_W // PS
HW = FH * FW                    # 16   (stand-in for in_h*in_w = 1200)
C = 32                          # aggregator in_channels  (stand-in for 1024)
OUT_C = 32                      # aggregator out_channels (stand-in for 1024)
MIX_DEPTH = 4
MLP_RATIO = 1
HID = HW * MLP_RATIO
OUT_ROWS = 4
KDIM = CIN * PS * PS
LN_EPS = 1e-5                   # nn.LayerNorm default
L2_EPS = 1e-12                  # F.normalize default
VMEM_LIMIT = 32 * 1024 * 1024   # explicit scoped-VMEM budget (re-derive at real scale / v7x)

# TODO(synk): the true backbone is a pretrained ResNet50 truncated after layer3
# (layers_to_crop=[4]); it is replaced here by a single strided-conv (patchify)
# + ReLU stem with deterministic synthetic weights.


# --------------------------------------------------- fused encoder kernel ---
def encoder_kernel(p_ref, wconv_ref, bconv_ref,
                   g_ref, be_ref, w1_ref, b1_ref, w2_ref, b2_ref,
                   wc_ref, bc_ref, wr_ref, br_ref,
                   o_ref, acc_ref):
    d = pl.program_id(1)

    # ---- backbone stem on the first depth step: (HW, KDIM) @ (KDIM, C) ------
    @pl.when(d == 0)
    def _():
        f = jnp.dot(p_ref[0], wconv_ref[...], preferred_element_type=jnp.float32)
        acc_ref[...] = jnp.maximum(f + bconv_ref[...], 0.0)    # ReLU, f32 carry

    # ---- one FeatureMixerLayer per grid step, token-major (HW, C) layout ----
    x = acc_ref[...]                                      # (HW, C) f32, carried across depth
    # LayerNorm over the HW axis (biased variance, as torch); stats in f32.
    mu = jnp.mean(x, axis=0, keepdims=True)               # (1, C)
    var = jnp.mean((x - mu) ** 2, axis=0, keepdims=True)
    xn = (x - mu) * lax.rsqrt(var + LN_EPS) * g_ref[0] + be_ref[0]
    xn16 = xn.astype(jnp.bfloat16)
    # Linear(HW->HID) -> ReLU -> Linear(HID->HW); bf16 MXU inputs, f32 accum.
    h = jnp.dot(w1_ref[0], xn16, preferred_element_type=jnp.float32) + b1_ref[0]
    h = jnp.maximum(h, 0.0).astype(jnp.bfloat16)          # (HID, C)
    upd = jnp.dot(w2_ref[0], h, preferred_element_type=jnp.float32) + b2_ref[0]
    acc_ref[...] = x + upd                                # residual kept in f32

    # ---- projections + L2 normalisation on the last mixer step --------------
    @pl.when(d == MIX_DEPTH - 1)
    def _():
        xf = acc_ref[...].astype(jnp.bfloat16)            # (HW, C)
        # channel_proj: (HW, C) @ (C, OUT_C) -> activation contracted on its
        # lane dim; no transpose of the big activation.
        y = jnp.dot(xf, wc_ref[...], preferred_element_type=jnp.float32) + bc_ref[...]
        # row_proj with torch-layout weight: (OUT_ROWS, HW) @ (HW, OUT_C).
        z = jnp.dot(wr_ref[...], y.astype(jnp.bfloat16),
                    preferred_element_type=jnp.float32) + br_ref[...]
        # F.normalize over the flattened vector (order-invariant); rsqrt -> EUP.
        ssq = jnp.sum(z * z, axis=(0, 1), keepdims=True)
        z = z * lax.rsqrt(jnp.maximum(ssq, L2_EPS * L2_EPS))
        o_ref[0] = z                                      # (OUT_ROWS, OUT_C): lane-dense store


def image_encoder(x, all_params):
    w_conv, b_conv, (g, be, w1, b1, w2, b2, wc, bc, wr, br) = all_params

    # im2col glue: (B, CIN, H, W) -> (B, HW, CIN*ps*ps), patch-major (token-major).
    # TODO(synk): fold this layout change into the kernel's DMA pattern (or feed
    # NHWC) when the real truncated-ResNet backbone replaces this patchify stub.
    p = x.reshape(B, CIN, FH, PS, FW, PS)
    p = p.transpose(0, 2, 4, 1, 3, 5).reshape(B, HW, KDIM).astype(jnp.bfloat16)

    out = pl.pallas_call(
        encoder_kernel,
        out_shape=jax.ShapeDtypeStruct((B, OUT_ROWS, OUT_C), jnp.float32),
        grid=(B, MIX_DEPTH),
        in_specs=[
            pl.BlockSpec((1, HW, KDIM), lambda b, d: (b, 0, 0)),   # im2col patches (per image)
            pl.BlockSpec((KDIM, C), lambda b, d: (0, 0)),          # conv weight
            pl.BlockSpec((1, C), lambda b, d: (0, 0)),             # conv bias
            pl.BlockSpec((1, HW, 1), lambda b, d: (d, 0, 0)),      # LN gamma (per layer)
            pl.BlockSpec((1, HW, 1), lambda b, d: (d, 0, 0)),      # LN beta
            pl.BlockSpec((1, HID, HW), lambda b, d: (d, 0, 0)),    # W1 (torch (out,in) layout)
            pl.BlockSpec((1, HID, 1), lambda b, d: (d, 0, 0)),     # b1
            pl.BlockSpec((1, HW, HID), lambda b, d: (d, 0, 0)),    # W2
            pl.BlockSpec((1, HW, 1), lambda b, d: (d, 0, 0)),      # b2
            pl.BlockSpec((C, OUT_C), lambda b, d: (0, 0)),         # Wc^T (pre-transposed)
            pl.BlockSpec((1, OUT_C), lambda b, d: (0, 0)),         # bc
            pl.BlockSpec((OUT_ROWS, HW), lambda b, d: (0, 0)),     # Wr (torch (out,in) layout)
            pl.BlockSpec((OUT_ROWS, 1), lambda b, d: (0, 0)),      # br
        ],
        out_specs=pl.BlockSpec((1, OUT_ROWS, OUT_C), lambda b, d: (b, 0, 0)),
        scratch_shapes=[pltpu.VMEM((HW, C), jnp.float32)],         # activation carried over depth
        compiler_params=pltpu.CompilerParams(
            dimension_semantics=("parallel", "arbitrary"),
            vmem_limit_bytes=VMEM_LIMIT),
    )(p, w_conv, b_conv, g, be, w1, b1, w2, b2, wc, bc, wr, br)

    # (B, OUT_ROWS, OUT_C) -> torch flatten(1) order (B, OUT_C*OUT_ROWS).  The
    # L2 norm is already applied in-kernel and is element-order invariant, so
    # this is a tiny (16 KB/image at real scale) layout-only reorder.
    return out.transpose(0, 2, 1).reshape(B, OUT_C * OUT_ROWS)


# ------------------------------------------------------------------ params ---
def init_params(key):
    ks = jax.random.split(key, 10)
    f32, bf16 = jnp.float32, jnp.bfloat16
    # Backbone patchify conv, weights flattened to (KDIM, C); bf16 for the MXU.
    w_conv = (jax.random.normal(ks[0], (KDIM, C), f32) / jnp.sqrt(KDIM)).astype(bf16)
    b_conv = jax.random.normal(ks[1], (1, C), f32) * 0.01
    # MixVPR aggregator.  torch nn.Linear stores (out, in); W1/W2/Wr are kept in
    # that layout (it is exactly what the token-major kernel consumes), and only
    # Wc is pre-transposed -- a free, host-side, load-time operation.
    g = jnp.ones((MIX_DEPTH, HW, 1), f32)      # LayerNorm gamma
    be = jnp.zeros((MIX_DEPTH, HW, 1), f32)    # LayerNorm beta
    w1 = (jax.random.normal(ks[2], (MIX_DEPTH, HID, HW), f32) / jnp.sqrt(HW)).astype(bf16)
    b1 = jax.random.normal(ks[3], (MIX_DEPTH, HID, 1), f32) * 0.01
    w2 = (jax.random.normal(ks[4], (MIX_DEPTH, HW, HID), f32) / jnp.sqrt(HID)).astype(bf16)
    b2 = jax.random.normal(ks[5], (MIX_DEPTH, HW, 1), f32) * 0.01
    wc = (jax.random.normal(ks[6], (C, OUT_C), f32) / jnp.sqrt(C)).astype(bf16)
    bc = jax.random.normal(ks[7], (1, OUT_C), f32) * 0.01
    wr = (jax.random.normal(ks[8], (OUT_ROWS, HW), f32) / jnp.sqrt(HW)).astype(bf16)
    br = jax.random.normal(ks[9], (OUT_ROWS, 1), f32) * 0.01
    return (w_conv, b_conv, (g, be, w1, b1, w2, b2, wc, bc, wr, br))


if __name__ == "__main__":
    key = jax.random.PRNGKey(0)
    kx, kp = jax.random.split(key)
    x = jax.random.normal(kx, (B, CIN, IMG_H, IMG_W), jnp.float32)  # NCHW, like PyTorch
    params = init_params(kp)
    out = jax.jit(image_encoder)(x, params)
    out = jax.block_until_ready(out)
    assert out.shape == (B, OUT_C * OUT_ROWS)
    assert bool(jnp.all(jnp.isfinite(out)))
    print("KERNEL_OK")
</pallas_src>

<mosaic_0001>
module attributes {stable_mosaic.version = 11 : i64} {
  func.func @encoder_kernel(%arg0: i32, %arg1: i32, %arg2: memref<1x16x192xbf16, #tpu.memory_space<vmem>>, %arg3: memref<192x32xbf16, #tpu.memory_space<vmem>>, %arg4: memref<1x32xf32, #tpu.memory_space<vmem>>, %arg5: memref<1x16x1xf32, #tpu.memory_space<vmem>>, %arg6: memref<1x16x1xf32, #tpu.memory_space<vmem>>, %arg7: memref<1x16x16xbf16, #tpu.memory_space<vmem>>, %arg8: memref<1x16x1xf32, #tpu.memory_space<vmem>>, %arg9: memref<1x16x16xbf16, #tpu.memory_space<vmem>>, %arg10: memref<1x16x1xf32, #tpu.memory_space<vmem>>, %arg11: memref<32x32xbf16, #tpu.memory_space<vmem>>, %arg12: memref<1x32xf32, #tpu.memory_space<vmem>>, %arg13: memref<4x16xbf16, #tpu.memory_space<vmem>>, %arg14: memref<4x1xf32, #tpu.memory_space<vmem>>, %arg15: memref<1x4x32xf32, #tpu.memory_space<vmem>>, %arg16: memref<16x32xf32, #tpu.memory_space<vmem>>) attributes {dimension_semantics = [#tpu.dimension_semantics<parallel>, #tpu.dimension_semantics<arbitrary>], iteration_bounds = array<i64: 2, 4>, scalar_prefetch = 0 : i64, scratch_operands = 1 : i64, tpu.core_type = #tpu.core_type<tc>, window_params = [{transform_indices = @transform_0, window_bounds = array<i64: 1, 16, 192>}, {pipeline_mode = #tpu.pipeline_mode<synchronous>, transform_indices = @transform_1, window_bounds = array<i64: 192, 32>}, {pipeline_mode = #tpu.pipeline_mode<synchronous>, transform_indices = @transform_2, window_bounds = array<i64: 1, 32>}, {transform_indices = @transform_3, window_bounds = array<i64: 1, 16, 1>}, {transform_indices = @transform_4, window_bounds = array<i64: 1, 16, 1>}, {transform_indices = @transform_5, window_bounds = array<i64: 1, 16, 16>}, {transform_indices = @transform_6, window_bounds = array<i64: 1, 16, 1>}, {transform_indices = @transform_7, window_bounds = array<i64: 1, 16, 16>}, {transform_indices = @transform_8, window_bounds = array<i64: 1, 16, 1>}, {pipeline_mode = #tpu.pipeline_mode<synchronous>, transform_indices = @transform_9, window_bounds = array<i64: 32, 32>}, {pipeline_mode = #tpu.pipeline_mode<synchronous>, transform_indices = @transform_10, window_bounds = array<i64: 1, 32>}, {pipeline_mode = #tpu.pipeline_mode<synchronous>, transform_indices = @transform_11, window_bounds = array<i64: 4, 16>}, {pipeline_mode = #tpu.pipeline_mode<synchronous>, transform_indices = @transform_12, window_bounds = array<i64: 4, 1>}, {transform_indices = @transform_13, window_bounds = array<i64: 1, 4, 32>}]} {
    %c0_i32 = arith.constant 0 : i32
    %0 = arith.cmpi eq, %arg1, %c0_i32 : i32
    %1 = arith.extui %0 : i1 to i32
    %c0_i32_0 = arith.constant 0 : i32
    %2 = arith.cmpi ne, %1, %c0_i32_0 : i32
    scf.if %2 {
      %c0_30 = arith.constant 0 : index
      %c0_31 = arith.constant 0 : index
      %c0_32 = arith.constant 0 : index
      %53 = vector.load %arg2[%c0_30, %c0_31, %c0_32] : memref<1x16x192xbf16, #tpu.memory_space<vmem>>, vector<1x16x192xbf16>
      %54 = vector.shape_cast %53 : vector<1x16x192xbf16> to vector<16x192xbf16>
      %c0_33 = arith.constant 0 : index
      %c0_34 = arith.constant 0 : index
      %55 = vector.load %arg3[%c0_33, %c0_34] : memref<192x32xbf16, #tpu.memory_space<vmem>>, vector<192x32xbf16>
      %cst_35 = arith.constant dense<0.000000e+00> : vector<16x32xf32>
      %56 = tpu.matmul %54, %55, %cst_35 {dimension_numbers = #tpu.dot_dimension_numbers<[1], [0], [0], [1], [0, 0, 1, 1], [], []>} : vector<16x192xbf16>, vector<192x32xbf16>, vector<16x32xf32> -> vector<16x32xf32>
      %c0_36 = arith.constant 0 : index
      %c0_37 = arith.constant 0 : index
      %57 = vector.load %arg4[%c0_36, %c0_37] : memref<1x32xf32, #tpu.memory_space<vmem>>, vector<1x32xf32>
      %58 = vector.broadcast %57 : vector<1x32xf32> to vector<16x32xf32>
      %59 = arith.addf %56, %58 : vector<16x32xf32>
      %cst_38 = arith.constant 0.000000e+00 : f32
      %60 = vector.broadcast %cst_38 : f32 to vector<16x32xf32>
      %61 = arith.maximumf %59, %60 : vector<16x32xf32>
      %c0_39 = arith.constant 0 : index
      %c0_40 = arith.constant 0 : index
      %62 = vector.load %arg16[%c0_39, %c0_40] : memref<16x32xf32, #tpu.memory_space<vmem>>, vector<16x32xf32>
      tpu.vector_store %arg16[%c0_39, %c0_40], %61 {strides = array<i32>} : memref<16x32xf32, #tpu.memory_space<vmem>>, vector<16x32xf32>,
    } else {
    }
    %c0 = arith.constant 0 : index
    %c0_1 = arith.constant 0 : index
    %3 = vector.load %arg16[%c0, %c0_1] : memref<16x32xf32, #tpu.memory_space<vmem>>, vector<16x32xf32>
    %cst = arith.constant dense<0.000000e+00> : vector<32xf32>
    %4 = vector.multi_reduction <add>, %3, %cst [0] : vector<16x32xf32> to vector<32xf32>
    %5 = vector.shape_cast %4 : vector<32xf32> to vector<1x32xf32>
    %cst_2 = arith.constant 1.600000e+01 : f32
    %6 = vector.broadcast %cst_2 : f32 to vector<1x32xf32>
    %7 = arith.divf %5, %6 : vector<1x32xf32>
    %8 = vector.broadcast %7 : vector<1x32xf32> to vector<16x32xf32>
    %9 = arith.subf %3, %8 : vector<16x32xf32>
    %10 = arith.mulf %9, %9 : vector<16x32xf32>
    %cst_3 = arith.constant dense<0.000000e+00> : vector<32xf32>
    %11 = vector.multi_reduction <add>, %10, %cst_3 [0] : vector<16x32xf32> to vector<32xf32>
    %12 = vector.shape_cast %11 : vector<32xf32> to vector<1x32xf32>
    %cst_4 = arith.constant 1.600000e+01 : f32
    %13 = vector.broadcast %cst_4 : f32 to vector<1x32xf32>
    %14 = arith.divf %12, %13 : vector<1x32xf32>
    %15 = vector.broadcast %7 : vector<1x32xf32> to vector<16x32xf32>
    %16 = arith.subf %3, %15 : vector<16x32xf32>
    %cst_5 = arith.constant 9.99999974E-6 : f32
    %17 = vector.broadcast %cst_5 : f32 to vector<1x32xf32>
    %18 = arith.addf %14, %17 : vector<1x32xf32>
    %19 = math.rsqrt %18 : vector<1x32xf32>
    %20 = vector.broadcast %19 : vector<1x32xf32> to vector<16x32xf32>
    %21 = arith.mulf %16, %20 : vector<16x32xf32>
    %c0_6 = arith.constant 0 : index
    %c0_7 = arith.constant 0 : index
    %c0_8 = arith.constant 0 : index
    %22 = vector.load %arg5[%c0_6, %c0_7, %c0_8] : memref<1x16x1xf32, #tpu.memory_space<vmem>>, vector<1x16x1xf32>
    %23 = vector.shape_cast %22 : vector<1x16x1xf32> to vector<16x1xf32>
    %24 = vector.broadcast %23 : vector<16x1xf32> to vector<16x32xf32>
    %25 = arith.mulf %21, %24 : vector<16x32xf32>
    %c0_9 = arith.constant 0 : index
    %c0_10 = arith.constant 0 : index
    %c0_11 = arith.constant 0 : index
    %26 = vector.load %arg6[%c0_9, %c0_10, %c0_11] : memref<1x16x1xf32, #tpu.memory_space<vmem>>, vector<1x16x1xf32>
    %27 = vector.shape_cast %26 : vector<1x16x1xf32> to vector<16x1xf32>
    %28 = vector.broadcast %27 : vector<16x1xf32> to vector<16x32xf32>
    %29 = arith.addf %25, %28 : vector<16x32xf32>
    %30 = arith.truncf %29 : vector<16x32xf32> to vector<16x32xbf16>
    %c0_12 = arith.constant 0 : index
    %c0_13 = arith.constant 0 : index
    %c0_14 = arith.constant 0 : index
    %31 = vector.load %arg7[%c0_12, %c0_13, %c0_14] : memref<1x16x16xbf16, #tpu.memory_space<vmem>>, vector<1x16x16xbf16>
    %32 = vector.shape_cast %31 : vector<1x16x16xbf16> to vector<16x16xbf16>
    %cst_15 = arith.constant dense<0.000000e+00> : vector<16x32xf32>
    %33 = tpu.matmul %32, %30, %cst_15 {dimension_numbers = #tpu.dot_dimension_numbers<[1], [0], [0], [1], [0, 0, 1, 1], [], []>} : vector<16x16xbf16>, vector<16x32xbf16>, vector<16x32xf32> -> vector<16x32xf32>
    %c0_16 = arith.constant 0 : index
    %c0_17 = arith.constant 0 : index
    %c0_18 = arith.constant 0 : index
    %34 = vector.load %arg8[%c0_16, %c0_17, %c0_18] : memref<1x16x1xf32, #tpu.memory_space<vmem>>, vector<1x16x1xf32>
    %35 = vector.shape_cast %34 : vector<1x16x1xf32> to vector<16x1xf32>
    %36 = vector.broadcast %35 : vector<16x1xf32> to vector<16x32xf32>
    %37 = arith.addf %33, %36 : vector<16x32xf32>
    %cst_19 = arith.constant 0.000000e+00 : f32
    %38 = vector.broadcast %cst_19 : f32 to vector<16x32xf32>
    %39 = arith.maximumf %37, %38 : vector<16x32xf32>
    %40 = arith.truncf %39 : vector<16x32xf32> to vector<16x32xbf16>
    %c0_20 = arith.constant 0 : index
    %c0_21 = arith.constant 0 : index
    %c0_22 = arith.constant 0 : index
    %41 = vector.load %arg9[%c0_20, %c0_21, %c0_22] : memref<1x16x16xbf16, #tpu.memory_space<vmem>>, vector<1x16x16xbf16>
    %42 = vector.shape_cast %41 : vector<1x16x16xbf16> to vector<16x16xbf16>
    %cst_23 = arith.constant dense<0.000000e+00> : vector<16x32xf32>
    %43 = tpu.matmul %42, %40, %cst_23 {dimension_numbers = #tpu.dot_dimension_numbers<[1], [0], [0], [1], [0, 0, 1, 1], [], []>} : vector<16x16xbf16>, vector<16x32xbf16>, vector<16x32xf32> -> vector<16x32xf32>
    %c0_24 = arith.constant 0 : index
    %c0_25 = arith.constant 0 : index
    %c0_26 = arith.constant 0 : index
    %44 = vector.load %arg10[%c0_24, %c0_25, %c0_26] : memref<1x16x1xf32, #tpu.memory_space<vmem>>, vector<1x16x1xf32>
    %45 = vector.shape_cast %44 : vector<1x16x1xf32> to vector<16x1xf32>
    %46 = vector.broadcast %45 : vector<16x1xf32> to vector<16x32xf32>
    %47 = arith.addf %43, %46 : vector<16x32xf32>
    %48 = arith.addf %3, %47 : vector<16x32xf32>
    %c0_27 = arith.constant 0 : index
    %c0_28 = arith.constant 0 : index
    %49 = vector.load %arg16[%c0_27, %c0_28] : memref<16x32xf32, #tpu.memory_space<vmem>>, vector<16x32xf32>
    tpu.vector_store %arg16[%c0_27, %c0_28], %48 {strides = array<i32>} : memref<16x32xf32, #tpu.memory_space<vmem>>, vector<16x32xf32>,
    %c3_i32 = arith.constant 3 : i32
    %50 = arith.cmpi eq, %arg1, %c3_i32 : i32
    %51 = arith.extui %50 : i1 to i32
    %c0_i32_29 = arith.constant 0 : i32
    %52 = arith.cmpi ne, %51, %c0_i32_29 : i32
    scf.if %52 {
      %c0_30 = arith.constant 0 : index
      %c0_31 = arith.constant 0 : index
      %53 = vector.load %arg16[%c0_30, %c0_31] : memref<16x32xf32, #tpu.memory_space<vmem>>, vector<16x32xf32>
      %54 = arith.truncf %53 : vector<16x32xf32> to vector<16x32xbf16>
      %c0_32 = arith.constant 0 : index
      %c0_33 = arith.constant 0 : index
      %55 = vector.load %arg11[%c0_32, %c0_33] : memref<32x32xbf16, #tpu.memory_space<vmem>>, vector<32x32xbf16>
      %cst_34 = arith.constant dense<0.000000e+00> : vector<16x32xf32>
      %56 = tpu.matmul %54, %55, %cst_34 {dimension_numbers = #tpu.dot_dimension_numbers<[1], [0], [0], [1], [0, 0, 1, 1], [], []>} : vector<16x32xbf16>, vector<32x32xbf16>, vector<16x32xf32> -> vector<16x32xf32>
      %c0_35 = arith.constant 0 : index
      %c0_36 = arith.constant 0 : index
      %57 = vector.load %arg12[%c0_35, %c0_36] : memref<1x32xf32, #tpu.memory_space<vmem>>, vector<1x32xf32>
      %58 = vector.broadcast %57 : vector<1x32xf32> to vector<16x32xf32>
      %59 = arith.addf %56, %58 : vector<16x32xf32>
      %c0_37 = arith.constant 0 : index
      %c0_38 = arith.constant 0 : index
      %60 = vector.load %arg13[%c0_37, %c0_38] : memref<4x16xbf16, #tpu.memory_space<vmem>>, vector<4x16xbf16>
      %61 = arith.truncf %59 : vector<16x32xf32> to vector<16x32xbf16>
      %cst_39 = arith.constant dense<0.000000e+00> : vector<4x32xf32>
      %62 = tpu.matmul %60, %61, %cst_39 {dimension_numbers = #tpu.dot_dimension_numbers<[1], [0], [0], [1], [0, 0, 1, 1], [], []>} : vector<4x16xbf16>, vector<16x32xbf16>, vector<4x32xf32> -> vector<4x32xf32>
      %c0_40 = arith.constant 0 : index
      %c0_41 = arith.constant 0 : index
      %63 = vector.load %arg14[%c0_40, %c0_41] : memref<4x1xf32, #tpu.memory_space<vmem>>, vector<4x1xf32>
      %64 = vector.broadcast %63 : vector<4x1xf32> to vector<4x32xf32>
      %65 = arith.addf %62, %64 : vector<4x32xf32>
      %66 = arith.mulf %65, %65 : vector<4x32xf32>
      %67 = vector.shape_cast %66 : vector<4x32xf32> to vector<1x4x32xf32>
      %cst_42 = arith.constant dense<0.000000e+00> : vector<1xf32>
      %68 = vector.multi_reduction <add>, %67, %cst_42 [1, 2] : vector<1x4x32xf32> to vector<1xf32>
      %69 = vector.shape_cast %68 : vector<1xf32> to vector<1x1x1xf32>
      %70 = vector.extract %69[0, 0, 0] : f32 from vector<1x1x1xf32>
      %71 = vector.broadcast %70 : f32 to vector<1x1xf32>
      %cst_43 = arith.constant 1.000000e-24 : f32
      %72 = vector.broadcast %cst_43 : f32 to vector<1x1xf32>
      %73 = arith.maximumf %71, %72 : vector<1x1xf32>
      %74 = math.rsqrt %73 : vector<1x1xf32>
      %75 = vector.broadcast %74 : vector<1x1xf32> to vector<4x32xf32>
      %76 = arith.mulf %65, %75 : vector<4x32xf32>
      %c0_44 = arith.constant 0 : index
      %c0_45 = arith.constant 0 : index
      %c0_46 = arith.constant 0 : index
      %77 = vector.load %arg15[%c0_44, %c0_45, %c0_46] : memref<1x4x32xf32, #tpu.memory_space<vmem>>, vector<1x4x32xf32>
      %78 = vector.shape_cast %77 : vector<1x4x32xf32> to vector<4x32xf32>
      %79 = vector.shape_cast %76 : vector<4x32xf32> to vector<1x4x32xf32>
      tpu.vector_store %arg15[%c0_44, %c0_45, %c0_46], %79 {strides = array<i32>} : memref<1x4x32xf32, #tpu.memory_space<vmem>>, vector<1x4x32xf32>,
    } else {
    }
    return
  }
  func.func @transform_0(%arg0: i32, %arg1: i32) -> (i32, i32, i32) {
    %c0_i32 = arith.constant 0 : i32
    %c0_i32_0 = arith.constant 0 : i32
    %c0_i32_1 = arith.constant 0 : i32
    return %arg0, %c0_i32, %c0_i32_0 : i32, i32, i32
  }
  func.func @transform_1(%arg0: i32, %arg1: i32) -> (i32, i32) {
    %c0_i32 = arith.constant 0 : i32
    %c0_i32_0 = arith.constant 0 : i32
    %c0_i32_1 = arith.constant 0 : i32
    return %c0_i32, %c0_i32_0 : i32, i32
  }
  func.func @transform_2(%arg0: i32, %arg1: i32) -> (i32, i32) {
    %c0_i32 = arith.constant 0 : i32
    %c0_i32_0 = arith.constant 0 : i32
    %c0_i32_1 = arith.constant 0 : i32
    return %c0_i32, %c0_i32_0 : i32, i32
  }
  func.func @transform_3(%arg0: i32, %arg1: i32) -> (i32, i32, i32) {
    %c0_i32 = arith.constant 0 : i32
    %c0_i32_0 = arith.constant 0 : i32
    %c0_i32_1 = arith.constant 0 : i32
    return %arg1, %c0_i32, %c0_i32_0 : i32, i32, i32
  }
  func.func @transform_4(%arg0: i32, %arg1: i32) -> (i32, i32, i32) {
    %c0_i32 = arith.constant 0 : i32
    %c0_i32_0 = arith.constant 0 : i32
    %c0_i32_1 = arith.constant 0 : i32
    return %arg1, %c0_i32, %c0_i32_0 : i32, i32, i32
  }
  func.func @transform_5(%arg0: i32, %arg1: i32) -> (i32, i32, i32) {
    %c0_i32 = arith.constant 0 : i32
    %c0_i32_0 = arith.constant 0 : i32
    %c0_i32_1 = arith.constant 0 : i32
    return %arg1, %c0_i32, %c0_i32_0 : i32, i32, i32
  }
  func.func @transform_6(%arg0: i32, %arg1: i32) -> (i32, i32, i32) {
    %c0_i32 = arith.constant 0 : i32
    %c0_i32_0 = arith.constant 0 : i32
    %c0_i32_1 = arith.constant 0 : i32
    return %arg1, %c0_i32, %c0_i32_0 : i32, i32, i32
  }
  func.func @transform_7(%arg0: i32, %arg1: i32) -> (i32, i32, i32) {
    %c0_i32 = arith.constant 0 : i32
    %c0_i32_0 = arith.constant 0 : i32
    %c0_i32_1 = arith.constant 0 : i32
    return %arg1, %c0_i32, %c0_i32_0 : i32, i32, i32
  }
  func.func @transform_8(%arg0: i32, %arg1: i32) -> (i32, i32, i32) {
    %c0_i32 = arith.constant 0 : i32
    %c0_i32_0 = arith.constant 0 : i32
    %c0_i32_1 = arith.constant 0 : i32
    return %arg1, %c0_i32, %c0_i32_0 : i32, i32, i32
  }
  func.func @transform_9(%arg0: i32, %arg1: i32) -> (i32, i32) {
    %c0_i32 = arith.constant 0 : i32
    %c0_i32_0 = arith.constant 0 : i32
    %c0_i32_1 = arith.constant 0 : i32
    return %c0_i32, %c0_i32_0 : i32, i32
  }
  func.func @transform_10(%arg0: i32, %arg1: i32) -> (i32, i32) {
    %c0_i32 = arith.constant 0 : i32
    %c0_i32_0 = arith.constant 0 : i32
    %c0_i32_1 = arith.constant 0 : i32
    return %c0_i32, %c0_i32_0 : i32, i32
  }
  func.func @transform_11(%arg0: i32, %arg1: i32) -> (i32, i32) {
    %c0_i32 = arith.constant 0 : i32
    %c0_i32_0 = arith.constant 0 : i32
    %c0_i32_1 = arith.constant 0 : i32
    return %c0_i32, %c0_i32_0 : i32, i32
  }
  func.func @transform_12(%arg0: i32, %arg1: i32) -> (i32, i32) {
    %c0_i32 = arith.constant 0 : i32
    %c0_i32_0 = arith.constant 0 : i32
    %c0_i32_1 = arith.constant 0 : i32
    return %c0_i32, %c0_i32_0 : i32, i32
  }
  func.func @transform_13(%arg0: i32, %arg1: i32) -> (i32, i32, i32) {
    %c0_i32 = arith.constant 0 : i32
    %c0_i32_0 = arith.constant 0 : i32
    %c0_i32_1 = arith.constant 0 : i32
    return %arg0, %c0_i32, %c0_i32_0 : i32, i32, i32
  }
}

</mosaic_0001>

<bundles_post_ra>
// kernel: image_encoder.1
= control target key start
LH: loop header
LB: loop body
LE: loop exit
PB: predicated region body
PF: predicated region fallthrough
CT: control target
= control target key end

     0   :  { %s1496_s25 = smov 0   ;;  %s1498_s26 = smov 0   ;;  %s1676_s0 = inlined_call_operand.vmem [shape: bf16[2,16,192], index: 0, kind: input, shape index: {}]   ;;  %s1677_s1 = inlined_call_operand.vmem [shape: bf16[192,32], index: 1, kind: input, shape index: {}]   ;;  %s1678_s2 = inlined_call_operand.vmem [shape: f32[1,32], index: 2, kind: input, shape index: {}]   ;;  %s1679_s3 = inlined_call_operand.vmem [shape: f32[4,16,1], index: 3, kind: input, shape index: {}]   ;;  %s1680_s4 = inlined_call_operand.vmem [shape: f32[4,16,1], index: 4, kind: input, shape index: {}]   ;;  %s1681_s5 = inlined_call_operand.vmem [shape: bf16[4,16,16], index: 5, kind: input, shape index: {}]   ;;  %s1682_s6 = inlined_call_operand.vmem [shape: f32[4,16,1], index: 6, kind: input, shape index: {}]   ;;  %s1683_s7 = inlined_call_operand.vmem [shape: bf16[4,16,16], index: 7, kind: input, shape index: {}]   ;;  %s1684_s8 = inlined_call_operand.vmem [shape: f32[4,16,1], index: 8, kind: input, shape index: {}]   ;;  %s1685_s9 = inlined_call_operand.vmem [shape: bf16[32,32], index: 9, kind: input, shape index: {}]   ;;  %s1686_s10 = inlined_call_operand.vmem [shape: f32[1,32], index: 10, kind: input, shape index: {}]   ;;  %s1687_s11 = inlined_call_operand.vmem [shape: bf16[4,16], index: 11, kind: input, shape index: {}]   ;;  %s1688_s12 = inlined_call_operand.vmem [shape: f32[4,1], index: 12, kind: input, shape index: {}]   ;;  %s1689_s13 = inlined_call_operand.vmem [shape: f32[2,4,32], index: 13, kind: output, shape index: {}]  }
   0x1   :  { %1693 = sst [smem:[#allocation8_spill]] %s1676_s0  ;;  %s1500_s27 = smov 0  }
   0x2   :  { %1694 = sst [smem:[#allocation9_spill]] %s1679_s3  ;;  %s1502_s28 = smov 0  }
   0x3   :  { %1695 = sst [smem:[#allocation10_spill]] %s1680_s4  ;;  %s1504_s29 = smov 0  }
   0x4   :  { %1696 = sst [smem:[#allocation11_spill]] %s1687_s11 }
   0x5 LB: > { %1697 = sst [smem:[#allocation3_spill]] %s1409_s27  ;;  %s32_s30 = sadd.s32 1, %s1409_s27  ;;  %s1417_s29 = sphi %s1504_s29, %s23_s29   ;;  %s1413_s28 = sphi %s1502_s28, %s1710_s28   ;;  %s1409_s27 = sphi %s1500_s27, %s1709_s27   ;;  %s1405_s26 = sphi %s1498_s26, %s1708_s26   ;;  %s1401_s25 = sphi %s1496_s25, %s1707_s25  }
   0x6   : > { %1698 = sst [smem:[#allocation4_spill]] %s1413_s28  ;;  %s35_s14 = sadd.s32 1, %s1413_s28 }
   0x7   : > { %1699 = sst [smem:[#allocation5_spill]] %s1417_s29  ;;  %p33_p0 = scmp.ge.s32.totalorder %s32_s30, 4 }
   0x8   : > { %p1217_p1 = scmp.ge.s32.totalorder %s1417_s29, 1  ;;  %p459_p2 = scmp.lt.s32.totalorder %s1417_s29, 9 }
   0x9   : > { %s1712_s30 = smov (%p33_p0, %s32_s30), 0  ;;  %s1714_s14 = smov (!%p33_p0, %s35_s14), %s1413_s28 }
   0xa   : > { %1700 = sst [smem:[#allocation6_spill]] %s1712_s30  ;;  %p460_p3 = pnand %p1217_p1, %p459_p2 }
   0xb   : > { %p37_p4 = scmp.ge.s32.totalorder %s1714_s14, 2  ;;  %p532_p5 = scmp.lt.s32.totalorder (!%p460_p3), %s1405_s26, 1 }
   0xc   : > { %463 = sbr.rel (%p460_p3) target bundleno = 1541 (0x605), region = 72  ;;  %p537_p6 = scmp.lt.s32.totalorder (!%p460_p3), %s1401_s25, 3 }
   0xd   : > { %s1716_s14 = smov (%p37_p4, %s1714_s14), 0  ;;  %s1702_s0 = sld [smem:[#allocation8_spill]] (!%p460_p3) }
   0xe   : > { %1701 = sst [smem:[#allocation7_spill]] %s1716_s14  ;;  %s1703_s3 = sld [smem:[#allocation9_spill]] (!%p460_p3) }
   0xf   : > { %s1704_s4 = sld [smem:[#allocation10_spill]] (!%p460_p3)  ;;  %p1233_p7 = scmp.ne.s32.totalorder (!%p460_p3), %s1401_s25, 0 }
  0x13   : > { %s1718_s26 = smov (!%p532_p5, %s1405_s26), 1  ;;  %v1353_v0 = vld [vmem:[%s1677_s1] sm:$0xff] (!%p1233_p7)   ;;  %v1419_v1 = vmov (!%p1233_p7), 0   ;;  %v1354_v2 = vld [vmem:[%s1677_s1 + $0x8] sm:$0xff] (!%p1233_p7)   ;;  %v1355_v3 = vld [vmem:[%s1677_s1 + $0x10] sm:$0xff] (!%p1233_p7)   ;;  %vm690_vm0 = vcmask (!%p1233_p7), 523264  }
  0x14   : > { %s538_s15 = scalar_select %p537_p6, %s1401_s25, 3 }
  0x15   : > { %s1262_s16 = sshll.u32 %s1718_s26, 4  ;;  %s1232_s17 = sshll.u32 %s1718_s26, 2  ;;  %694 = vmatprep.subr.bf16.mxu0 (!%p1233_p7), %v1419_v1  ;;  %v1356_v4 = vld [vmem:[%s1677_s1 + $0x18] sm:$0xff] (!%p1233_p7)   ;;  %v1357_v6 = vld [vmem:[%s1677_s1 + $0x20] sm:$0xff] (!%p1233_p7)   ;;  %v1358_v7 = vld [vmem:[%s1677_s1 + $0x28] sm:$0xff] (!%p1233_p7)   ;;  %vm737_vm1 = vcmask (!%p1233_p7), 261120  }
  0x16   : > { %s1533_s20 = scalar_lea.vmem %s1702_s0, %s1262_s16  ;;  %s1263_s21 = sshll.u32 %s538_s15, 4  ;;  %695 = vmatpush1.bf16.msra.mxu0 (!%p1233_p7), %v1353_v0  ;;  %v1359_v8 = vld [vmem:[%s1677_s1 + $0x30] sm:$0xff] (!%p1233_p7)   ;;  %v1360_v9 = vld [vmem:[%s1677_s1 + $0x38] sm:$0xff] (!%p1233_p7)   ;;  %v1361_v10 = vld [vmem:[%s1677_s1 + $0x40] sm:$0xff] (!%p1233_p7)  }
  0x17   : > { %s1538_s24 = scalar_lea.vmem %s1703_s3, %s1263_s21  ;;  %s1543_s28 = scalar_lea.vmem %s1704_s4, %s1263_s21  ;;  %696 = vmatprep.subr.bf16.mxu0 (!%p1233_p7), %v1419_v1  ;;  %v1367_v5 = vld [vmem:[%s1533_s20 + $0x4] ss:$8 sps:$4 sm:$0xff] (!%p1233_p7)   ;;  %v1363_v12 = vld [vmem:[%s1677_s1 + $0x50] sm:$0xff] (!%p1233_p7)   ;;  %v1364_v13 = vld [vmem:[%s1677_s1 + $0x58] sm:$0xff] (!%p1233_p7)  }
  0x18   : > { %s1265_s27 = sshll.u32 %s538_s15, 3  ;;  %s1548_s26 = scalar_lea.vmem %s1682_s6, %s1263_s21  ;;  %1249 = vmatprep.mubr.msk.bf16.mxu0 (!%p1233_p7), %vm690_vm0, %v1367_v5  ;;  %v1362_v11 = vld [vmem:[%s1677_s1 + $0x48] sm:$0xff] (!%p1233_p7)   ;;  %v1234_v15 = vld [vmem:[%s1678_s2] ss:$0 sm:$0xff] (!%p1233_p7) }
  0x19   : > { %s1553_s19 = scalar_lea.vmem %s1681_s5, %s1265_s27  ;;  %s1558_s23 = scalar_lea.vmem %s1683_s7, %s1265_s27  ;;  %v1365_v14 = vld [vmem:[%s1533_s20] ss:$8 sps:$4 sm:$0xff] (!%p1233_p7)  }
  0x1a   : > { %s1563_s14 = scalar_lea.vmem %s1684_s8, %s1263_s21  ;;  %s1568_s11 = scalar_lea.vmem %s1689_s13, %s1232_s17  ;;  %697 = vmatpush1.bf16.msra.mxu0 (!%p1233_p7), %v1354_v2 }
  0x1b   : > { %575 = sbr.rel (%p1233_p7) target bundleno = 288 (0x120), region = 76  ;;  %698 = vmatprep.subr.bf16.mxu0 (!%p1233_p7), %v1419_v1 }
  0x1e   : > { %699 = vmatpush1.bf16.msra.mxu0 (!%p1233_p7), %v1355_v3 }
  0x1f   : > { %700 = vmatprep.subr.bf16.mxu0 (!%p1233_p7), %v1419_v1 }
  0x22   : > { %701 = vmatpush1.bf16.msra.mxu0 %v1356_v4 }
  0x23   : > { %702 = vmatprep.subr.bf16.mxu0 %v1419_v1 }
  0x26   : > { %703 = vmatpush1.bf16.msra.mxu0 %v1357_v6 }
  0x27   : > { %704 = vmatprep.subr.bf16.mxu0 %v1419_v1 }
  0x2a   : > { %705 = vmatpush1.bf16.msra.mxu0 %v1358_v7 }
  0x2b   : > { %706 = vmatprep.subr.bf16.mxu0 %v1419_v1 }
  0x2e   : > { %707 = vmatpush1.bf16.msra.mxu0 %v1359_v8 }
  0x2f   : > { %708 = vmatprep.subr.bf16.mxu0 %v1419_v1 }
  0x32   : > { %709 = vmatpush1.bf16.msra.mxu0 %v1360_v9 }
  0x33   : > { %710 = vmatprep.subr.bf16.mxu0 %v1419_v1 }
  0x36   : > { %711 = vmatpush1.bf16.msra.mxu0 %v1361_v10 }
  0x37   : > { %712 = vmatprep.subr.bf16.mxu0 %v1419_v1 }
  0x3a   : > { %713 = vmatpush1.bf16.msra.mxu0 %v1362_v11 }
  0x3b   : > { %714 = vmatprep.subr.bf16.mxu0 %v1419_v1 }
  0x3e   : > { %715 = vmatpush1.bf16.msra.mxu0 %v1363_v12 }
  0x3f   : > { %716 = vmatprep.subr.bf16.mxu0 %v1419_v1 }
  0x42   : > { %717 = vmatpush1.bf16.msra.mxu0 %v1364_v13 }
  0x45   : > { %727 = vmatmul.mubr.bf16.vlgmr.msra.gmra.mrb[0].mxu0 %v1365_v14 }
 0x118   : > { %v728_v16 = vpop.f32.mrb[0].mxu0 }
 0x119   : > { %v729_v17 = vadd.f32 %v1234_v15, %v728_v16  ;;  %v730_v18 = vpop.f32.mrb[1].mxu0 }
 0x11a   : > { %v731_v19 = vpop.f32.mrb[2].mxu0 }
 0x11b   : > { %v735_v20 = vmax.f32 %v729_v17, 0.0  ;;  %v732_v21 = vadd.f32 %v1234_v15, %v731_v19  ;;  %v733_v22 = vpop.f32.mrb[3].mxu0 }
 0x11d   : > { %738 = vst.msk [vmem:[#allocation2] sm:$0xff] %vm737_vm1, %v735_v20  ;;  %v736_v23 = vmax.f32 %v732_v21, 0.0 }
 0x11f   : > { %739 = vst.msk [vmem:[#allocation2 + $0x8] sm:$0xff] %vm737_vm1, %v736_v23 }
 0x120 PF: > { %v786_v24 = vld [vmem:[%s1543_s28] sm:$0xff]  ;;  %v1420_v26 = vmov 0   ;;  %v787_v27 = vld [vmem:[%s1543_s28 + $0x8] sm:$0xff]  ;;  %v1421_v33 = vmov 0.0   ;;  %vm1422_vm2 = vmmov 0   ;;  %vm742_vm3 = vcmask 261120  }
 0x121   : > { %v772_v25 = vld [vmem:[%s1538_s24] sm:$0xff]  ;;  %1369 = vset.pattern.permute.xlu1 %v1420_v26  ;;  %1368 = vset.pattern.permute.xlu0 %v1420_v26  ;;  %v773_v28 = vld [vmem:[%s1538_s24 + $0x8] sm:$0xff]  ;;  %vm820_vm4 = vcmask 130048   ;;  %p1254_p8 = scmp.ne.s32.totalorder %s1401_s25, 3 }
 0x122   : > { %790 = vperm.xlu1 %1369, %v786_v24   ;;  %776 = vperm.xlu0 %1368, %v772_v25   ;;  %v804_v29 = vld [vmem:[%s1548_s26 + $0x8] sm:$0xff]  ;;  %v803_v30 = vld [vmem:[%s1548_s26] sm:$0xff]  ;;  %vm1424_vm5 = vmmov (!%p1254_p8), 0   ;;  %s1705_s4 = sld [smem:[#allocation11_spill]] (!%p1254_p8)  ;;  %vm1061_vm6 = vcmask (!%p1254_p8), 257024  }
 0x123   : > { %v871_v31 = vld [vmem:[%s1563_s14 + $0x8] sm:$0xff]  ;;  %v870_v32 = vld [vmem:[%s1563_s14] sm:$0xff]  ;;  %1278 = vmatprep.subr.bf16.mxu0 %v1421_v33  ;;  %1284 = vmatprep.subr.bf16.mxu1 %v1421_v33 }
 0x124   : > { %1280 = vmatprep.mubr.msk.bf16.mxu0 %vm1422_vm2, %v1421_v33  ;;  %1286 = vmatprep.mubr.msk.bf16.mxu1 %vm1422_vm2, %v1421_v33  ;;  %v1620_v34 = vld [vmem:[#allocation2] sm:$0xff]  ;;  %v1423_v33 = vmov (!%p1254_p8), 0.0  }
 0x125   : > { %v743_v36 = vsel %vm742_vm3, %v1620_v34, 0.0  ;;  %v1370_v9 = vld [vmem:[%s1553_s19] sm:$0xff]  }
 0x126   : > { %795 = vperm.xlu1 %1369, %v787_v27   ;;  %781 = vperm.xlu0 %1368, %v773_v28   ;;  %v1622_v35 = vld [vmem:[#allocation2 + $0x8] sm:$0xff]  ;;  %v1371_v21 = vld [vmem:[%s1558_s23] sm:$0xff]  }
 0x127   : > { %v744_v37 = vsel %vm742_vm3, %v1622_v35, 0.0 }
 0x128   : > { %v745_v38 = vadd.f32 %v744_v37, %v743_v36 }
 0x12a   : > { %812 = vperm.xlu1 %1369, %v804_v29   ;;  %807 = vperm.xlu0 %1368, %v803_v30   ;;  %v746_v39 = vrot.slane %v745_v38, 4 }
 0x12c   : > { %v747_v40 = vadd.f32 %v746_v39, %v745_v38  ;;  %v1011_v38 = vld [vmem:[%s1688_s12] sm:$0xf] (!%p1254_p8)  ;;  %v1425_v39 = vmov (!%p1254_p8), 0  }
 0x12e   : > { %879 = vperm.xlu1 %1369, %v871_v31   ;;  %874 = vperm.xlu0 %1368, %v870_v32   ;;  %v748_v41 = vrot.slane %v747_v40, 2  ;;  %v1375_v32 = vld [vmem:[%s1685_s9] sm:$0xff] (!%p1254_p8)  }
 0x130   : > { %v749_v42 = vadd.f32 %v748_v41, %v747_v40  ;;  %v1255_v40 = vld [vmem:[%s1686_s10] ss:$0 sm:$0xff] (!%p1254_p8) }
 0x132   : > { %v750_v43 = vrot.slane %v749_v42, 1  ;;  %1374 = vset.pattern.permute.xlu0 (!%p1254_p8), %v1425_v39 }
 0x133   : > { %1014 = vperm.xlu0 (!%p1254_p8), %1374, %v1011_v38  }
 0x134   : > { %v751_v44 = vadd.f32 %v750_v43, %v749_v42 }
 0x136   : > { %v753_v45 = vmul.f32 0.0625, %v751_v44 }
 0x138   : > { %v754_v46 = vsub.f32 %v1620_v34, %v753_v45  ;;  %v755_v47 = vsub.f32 %v1622_v35, %v753_v45 }
 0x13a   : > { %v756_v48 = vmul.f32 %v754_v46, %v754_v46  ;;  %v757_v49 = vmul.f32 %v755_v47, %v755_v47 }
 0x13c   : > { %v758_v50 = vsel %vm742_vm3, %v756_v48, 0.0  ;;  %v759_v51 = vsel %vm742_vm3, %v757_v49, 0.0  ;;  %v1009_v48 = vld [vmem:[%s1705_s4] sm:$0x3] (!%p1254_p8) }
 0x13d   : > { %v760_v52 = vadd.f32 %v759_v51, %v758_v50 }
 0x13f   : > { %v761_v53 = vrot.slane %v760_v52, 4 }
 0x141   : > { %v762_v54 = vadd.f32 %v761_v53, %v760_v52 }
 0x143   : > { %v763_v55 = vrot.slane %v762_v54, 2 }
 0x145   : > { %v764_v56 = vadd.f32 %v763_v55, %v762_v54 }
 0x147   : > { %v765_v57 = vrot.slane %v764_v56, 1 }
 0x149   : > { %v766_v58 = vadd.f32 %v765_v57, %v764_v56 }
 0x14b   : > { %v767_v59 = vmul.f32 0.0625, %v766_v58 }
 0x14d   : > { %v768_v60 = vadd.f32 1e-05, %v767_v59 }
 0x14f   : > { %1372 = vrsqrt.f32 %v768_v60 }
 0x159   : > { %v1373_v61 = vpop.eup %1372 }
 0x15a   : > { %v770_v62 = vmul.f32 %v1373_v61, %v754_v46  ;;  %v771_v1 = vmul.f32 %v1373_v61, %v755_v47 }
 0x1a1   : > { %v791_v63 = vpop.permute.xlu1 %790  ;;  %v777_v0 = vpop.permute.xlu0 %776 }
 0x1a2   : > { %v784_v2 = vmul.f32 %v777_v0, %v770_v62 }
 0x1a4   : > { %v798_v6 = vadd.f32 %v791_v63, %v784_v2 }
 0x1a5   : > { %v782_v3 = vpop.permute.xlu0 %781  ;;  %v796_v5 = vpop.permute.xlu1 %795 }
 0x1a6   : > { %v785_v4 = vmul.f32 %v782_v3, %v771_v1 }
 0x1a8   : > { %v799_v7 = vadd.f32 %v796_v5, %v785_v4 }
 0x1a9   : > { %v808_v10 = vpop.permute.xlu0 %807  ;;  %v813_v14 = vpop.permute.xlu1 %812 }
 0x1aa   : > { %v800_v8 = vpack.c.bf16 %v799_v7, %v798_v6 }
 0x1ac   : > { %1279 = vmatpush3.bf16.msra.mxu0 %v800_v8 }
 0x1ad   : > { %v875_v22 = vpop.permute.xlu0 %874  ;;  %v880_v26 = vpop.permute.xlu1 %879  ;;  %1290 = vmatprep.subr.bf16.mxu0 (!%p1254_p8), %v1423_v33 }
 0x1af   : > { %1281 = vmatmul.mubr.msk.bf16.vlgmr.msra.gmra.mrb[0].mxu0 %vm820_vm4, %v1370_v9 }
 0x1b0   : > { %1291 = vmatpush3.bf16.msra.mxu0 (!%p1254_p8), %v1375_v32  ;;  %1294 = vmatprep.mubr.msk.bf16.mxu0 (!%p1254_p8), %vm1424_vm5, %v1423_v33 }
 0x1b1   : > { %1292 = vmatprep.subr.bf16.mxu0 (!%p1254_p8), %v1423_v33 }
 0x1b2   : > { %v1015_v49 = vpop.permute.xlu0 (!%p1254_p8), %1014 }
 0x282   : > { %v858_v11 = vpop.f32.mrb[0].mxu0 }
 0x283   : > { %v859_v12 = vadd.f32 %v858_v11, %v808_v10  ;;  %v1282_v13 = vpop.f32.mrb[1].mxu0 }
 0x284   : > { %v861_v15 = vpop.f32.mrb[2].mxu0 }
 0x285   : > { %v862_v16 = vadd.f32 %v861_v15, %v813_v14  ;;  %v1283_v17 = vpop.f32.mrb[3].mxu0  ;;  %v865_v18 = vmax.f32 %v859_v12, 0.0 }
 0x287   : > { %v866_v19 = vmax.f32 %v862_v16, 0.0 }
 0x289   : > { %v867_v20 = vpack.c.bf16 %v866_v19, %v865_v18 }
 0x28b   : > { %1285 = vmatpush3.bf16.msra.mxu1 %v867_v20 }
 0x28c   : > { %1298 = vmatprep.subr.bf16.mxu1 (!%p1254_p8), %v1423_v33 }
 0x28e   : > { %1287 = vmatmul.mubr.msk.bf16.vlgmr.msra.gmra.mrb[0].mxu1 %vm820_vm4, %v1371_v21 }
 0x28f   : > { %1300 = vmatprep.mubr.msk.bf16.mxu1 (!%p1254_p8), %vm1424_vm5, %v1423_v33 }
 0x361   : > { %v924_v23 = vpop.f32.mrb[0].mxu1 }
 0x362   : > { %v925_v24 = vadd.f32 %v924_v23, %v875_v22  ;;  %v1288_v25 = vpop.f32.mrb[1].mxu1  ;;  %938 = sbr.rel (%p1254_p8) target bundleno = 1541 (0x605), region = 80 }
 0x363   : > { %v927_v27 = vpop.f32.mrb[2].mxu1 }
 0x364   : > { %v931_v28 = vadd.f32 %v925_v24, %v1620_v34  ;;  %v928_v29 = vadd.f32 %v927_v27, %v880_v26  ;;  %v1289_v30 = vpop.f32.mrb[3].mxu1  ;;  %v1376_v34 = vld [vmem:[%s1685_s9 + $0x8] sm:$0xff] (!%p1254_p8)  }
 0x365   : > { %1293 = vmatpush3.bf16.msra.mxu0 (!%p1254_p8), %v1376_v34 }
 0x366   : > { %933 = vst.msk [vmem:[#allocation2] sm:$0xff] %vm742_vm3, %v931_v28  ;;  %v932_v31 = vadd.f32 %v928_v29, %v1622_v35 }
 0x368   : > { %934 = vst.msk [vmem:[#allocation2 + $0x8] sm:$0xff] %vm742_vm3, %v932_v31 }
 0x36d   : > { %v939_v35 = vld [vmem:[#allocation2] sm:$0xff] }
 0x36f   : > { %v940_v36 = vld [vmem:[#allocation2 + $0x8] sm:$0xff] }
 0x370   : > { %v941_v37 = vpack.c.bf16 %v940_v36, %v939_v35 }
 0x372   : > { %1295 = vmatmul.mubr.msk.bf16.vlgmr.msra.gmra.mrb[0].mxu0 %vm742_vm3, %v941_v37 }
 0x445   : > { %v1002_v41 = vpop.f32.mrb[0].mxu0 }
 0x446   : > { %v1296_v42 = vpop.f32.mrb[1].mxu0  ;;  %v1003_v44 = vadd.f32 %v1255_v40, %v1002_v41 }
 0x447   : > { %v1005_v43 = vpop.f32.mrb[2].mxu0 }
 0x448   : > { %v1006_v45 = vadd.f32 %v1255_v40, %v1005_v43  ;;  %v1297_v46 = vpop.f32.mrb[3].mxu0 }
 0x44a   : > { %v1010_v47 = vpack.c.bf16 %v1006_v45, %v1003_v44 }
 0x44c   : > { %1299 = vmatpush3.bf16.msra.mxu1 %v1010_v47 }
 0x44f   : > { %1301 = vmatmul.mubr.msk.bf16.vlgmr.msra.gmra.mrb[0].mxu1 %vm820_vm4, %v1009_v48 }
 0x522   : > { %v1054_v50 = vpop.f32.mrb[0].mxu1 }
 0x523   : > { %v1055_v51 = vadd.f32 %v1054_v50, %v1015_v49  ;;  %v1302_v52 = vpop.f32.mrb[1].mxu1 }
 0x524   : > { %v1057_v53 = vpop.f32.mrb[2].mxu1 }
 0x525   : > { %v1303_v54 = vpop.f32.mrb[3].mxu1  ;;  %v1060_v55 = vmul.f32 %v1055_v51, %v1055_v51 }
 0x527   : > { %v1062_v56 = vsel %vm1061_vm6, %v1060_v55, 0.0 }
 0x528   : > { %1063 = vadd.xlane.f32.xlu0 %v1062_v56 }
 0x5b5   : > { %v1064_v57 = vpop.xlane.xlu0 %1063 }
 0x5b6   : > { %v1065_v58 = vrot.slane %v1064_v57, 4 }
 0x5b8   : > { %v1066_v59 = vadd.f32 %v1065_v58, %v1064_v57 }
 0x5ba   : > { %v1067_v60 = vrot.slane %v1066_v59, 2 }
 0x5bc   : > { %v1068_v61 = vadd.f32 %v1067_v60, %v1066_v59 }
 0x5be   : > { %v1069_v62 = vrot.slane %v1068_v61, 1 }
 0x5c0   : > { %v1070_v63 = vadd.f32 %v1069_v62, %v1068_v61 }
 0x5c2   : > { %1304 = vpush %v1070_v63 }
 0x5f3   : > { %s1305_s27 = spop %1304 }
 0x5f4   : > { %v1072_v0 = vstv %s1305_s27 }
 0x5f5   : > { %v1073_v1 = vmax.f32 %v1072_v0, 1e-24 }
 0x5f7   : > { %1377 = vrsqrt.f32 %v1073_v1 }
 0x601   : > { %v1378_v2 = vpop.eup %1377 }
 0x602   : > { %v1075_v3 = vmul.f32 %v1378_v2, %v1055_v51 }
 0x604   : > { %1076 = vst.msk [vmem:[%s1568_s11] sm:$0xf] %vm1061_vm6, %v1075_v3 }
 0x605 PF: > { %s1706_s17 = sld [smem:[#allocation5_spill]]  ;;  %s1707_s25 = sld [smem:[#allocation3_spill]] }
 0x606   : > { %s1708_s26 = sld [smem:[#allocation4_spill]]  ;;  %s1709_s27 = sld [smem:[#allocation6_spill]] }
 0x607   : > { %s1710_s28 = sld [smem:[#allocation7_spill]] }
 0x60b   : > { %s23_s29 = sadd.s32 1, %s1706_s17  }
 0x60c   : > { %p20_p9 = scmp.ge.s32.totalorder %s23_s29, 10  }
 0x60e   :  { %22 = sbr.rel (!%p20_p9) target bundleno = 5 (0x5), region = 128 }

</bundles_post_ra>
